<compile_context>
chip_gen: v7x
topology: tpu7x:2x2x1
jax: 0.10.0
libtpu: 0.0.40
codegen_flags: <defaults>
</compile_context>

<pallas_src>
import jax
import jax.numpy as jnp
from jax.experimental import pallas as pl
from jax.experimental.pallas import tpu as pltpu

LANES = 128
PAD_ROWS = 16       # row padding unit: multiple of both f32 (8) and bf16 (16) sublane tiles
NCORES = 2          # leading "parallel" grid axis; lets v7x use both TensorCores


def _make_kernel(block_rows, blocks_per_core, rows_p, needs_mask):
    """Builds the streaming-reduction kernel with static tiling params baked in."""

    def kernel(pred_ref, tgt_ref, acc_ref):
        c = pl.program_id(0)          # core axis ("parallel")
        i = pl.program_id(1)          # streaming axis ("arbitrary")

        @pl.when(i == 0)
        def _():
            acc_ref[...] = jnp.zeros_like(acc_ref)

        p = pred_ref[...].astype(jnp.float32)
        t = tgt_ref[...].astype(jnp.float32)

        if needs_mask:
            # Rows past the end of the padded array: ragged tail of the last
            # block, or a duplicated block on a spare core iteration (the
            # index_map clamps).  Zero them BEFORE any log so unspecified
            # block padding can never produce NaN/Inf.
            row0 = (c * blocks_per_core + i) * block_rows
            rid = row0 + jax.lax.broadcasted_iota(
                jnp.int32, (block_rows, LANES), 0)
            valid = rid < rows_p
            p = jnp.where(valid, p, 0.0)
            t = jnp.where(valid, t, 0.0)

        # torch.nn.BCELoss clamps each log term at -100.
        log_p = jnp.maximum(jnp.log(p), -100.0)
        log_1mp = jnp.maximum(jnp.log1p(-p), -100.0)
        # -(BCE element) = log(1-p) + t*(log p - log(1-p)); negated once outside.
        neg_bce = log_1mp + t * (log_p - log_1mp)

        # Lane-preserving row sums only; the cross-lane reduce happens once,
        # outside the kernel.
        acc_ref[0, :] += jnp.sum(neg_bce, axis=0)
        acc_ref[1, :] += jnp.sum(p * t, axis=0)
        acc_ref[2, :] += jnp.sum(p * p + t * t, axis=0)
        # acc_ref[3, :] stays zero (kept so the output slab is a power-of-2 rows).

    return kernel


def _stream_dtype(x):
    # bf16 stays bf16 in HBM (half the DMA bytes); everything else goes f32.
    if x.dtype == jnp.bfloat16:
        return x
    return x.astype(jnp.float32)


def bce_dice_loss(pred, target, *, block_rows=4096):
    assert pred.shape == target.shape, (
        f"predict {pred.shape} & target {target.shape} shape do not match")
    n = pred.size
    assert n > 0

    pred_f = _stream_dtype(pred.reshape(-1))
    tgt_f = _stream_dtype(target.reshape(-1))

    # Zero-pad to a multiple of 16*128 elements (zeros add 0 to every sum).
    pad = (-n) % (PAD_ROWS * LANES)
    if pad:
        pred_f = jnp.pad(pred_f, (0, pad))
        tgt_f = jnp.pad(tgt_f, (0, pad))

    rows_p = (n + pad) // LANES                        # multiple of 16
    block_rows = max(PAD_ROWS, (block_rows // PAD_ROWS) * PAD_ROWS)
    block_rows = min(block_rows, rows_p)               # stays a multiple of 16
    pred2 = pred_f.reshape(rows_p, LANES)
    tgt2 = tgt_f.reshape(rows_p, LANES)

    total_blocks = pl.cdiv(rows_p, block_rows)
    blocks_per_core = pl.cdiv(total_blocks, NCORES)
    # Any partial tail block or clamped spare iteration? (static Python bool)
    needs_mask = (NCORES * blocks_per_core * block_rows) != rows_p

    def in_map(c, i):
        # Clamp so spare iterations re-read a valid block; their contribution
        # is masked to zero inside the kernel.
        return (jnp.minimum(c * blocks_per_core + i, total_blocks - 1), 0)

    in_spec = pl.BlockSpec((block_rows, LANES), in_map)
    out_spec = pl.BlockSpec((None, 4, LANES), lambda c, i: (c, 0, 0))

    kernel = _make_kernel(block_rows, blocks_per_core, rows_p, needs_mask)

    partials = pl.pallas_call(
        kernel,
        out_shape=jax.ShapeDtypeStruct((NCORES, 4, LANES), jnp.float32),
        grid_spec=pltpu.PrefetchScalarGridSpec(
            num_scalar_prefetch=0,
            grid=(NCORES, blocks_per_core),
            in_specs=[in_spec, in_spec],
            out_specs=out_spec,
        ),
        compiler_params=pltpu.CompilerParams(
            dimension_semantics=("parallel", "arbitrary"),
            vmem_limit_bytes=32 * 1024 * 1024),
    )(pred2, tgt2)

    sums = jnp.sum(partials, axis=(0, 2))              # (4,)
    neg_bce_sum, pt_sum, pptt_sum = sums[0], sums[1], sums[2]
    smooth = 1e-5
    bce_loss = -neg_bce_sum / jnp.float32(n)
    dice_coef = 2.0 * pt_sum / (pptt_sum + smooth)
    return bce_loss, 1.0 - dice_coef


def _reference(pred, target):
    p = pred.reshape(-1).astype(jnp.float32)
    t = target.reshape(-1).astype(jnp.float32)
    log_p = jnp.maximum(jnp.log(p), -100.0)
    log_1mp = jnp.maximum(jnp.log1p(-p), -100.0)
    bce = jnp.mean(-(t * log_p + (1.0 - t) * log_1mp))
    dice = 2.0 * jnp.sum(p * t) / (jnp.sum(p * p) + jnp.sum(t * t) + 1e-5)
    return bce, 1.0 - dice


if __name__ == "__main__":
    key = jax.random.PRNGKey(0)

    # Test 1: NCHW inputs matching the PyTorch convention (batch=2, channels=4, 16x16).
    k1, k2, k3, k4 = jax.random.split(key, 4)
    shape = (2, 4, 16, 16)
    pred = jax.nn.sigmoid(jax.random.normal(k1, shape, dtype=jnp.float32))
    target = (jax.random.uniform(k2, shape) > 0.5).astype(jnp.float32)

    bce_loss, dice_loss = bce_dice_loss(pred, target)
    bce_loss, dice_loss = jax.block_until_ready((bce_loss, dice_loss))
    ref_bce, ref_dice = _reference(pred, target)
    assert jnp.allclose(bce_loss, ref_bce, rtol=1e-5, atol=1e-5), (bce_loss, ref_bce)
    assert jnp.allclose(dice_loss, ref_dice, rtol=1e-5, atol=1e-5), (dice_loss, ref_dice)

    # Test 2: ragged element count (exercises the zero-pad + tail-mask path).
    shape2 = (3, 5, 7, 11)
    pred2 = jax.nn.sigmoid(jax.random.normal(k3, shape2, dtype=jnp.float32))
    target2 = (jax.random.uniform(k4, shape2) > 0.5).astype(jnp.float32)

    bce2, dice2 = bce_dice_loss(pred2, target2)
    bce2, dice2 = jax.block_until_ready((bce2, dice2))
    ref_bce2, ref_dice2 = _reference(pred2, target2)
    assert jnp.allclose(bce2, ref_bce2, rtol=1e-5, atol=1e-5), (bce2, ref_bce2)
    assert jnp.allclose(dice2, ref_dice2, rtol=1e-5, atol=1e-5), (dice2, ref_dice2)

    print("KERNEL_OK")
</pallas_src>

<mosaic_0001>
module attributes {stable_mosaic.version = 11 : i64} {
  func.func @kernel(%arg0: i32, %arg1: i32, %arg2: memref<16x128xf32, #tpu.memory_space<vmem>>, %arg3: memref<16x128xf32, #tpu.memory_space<vmem>>, %arg4: memref<1x4x128xf32, #tpu.memory_space<vmem>>) attributes {dimension_semantics = [#tpu.dimension_semantics<parallel>, #tpu.dimension_semantics<arbitrary>], iteration_bounds = array<i64: 2, 1>, scalar_prefetch = 0 : i64, scratch_operands = 0 : i64, tpu.core_type = #tpu.core_type<tc>, window_params = [{transform_indices = @transform_0, window_bounds = array<i64: 16, 128>}, {transform_indices = @transform_1, window_bounds = array<i64: 16, 128>}, {transform_indices = @transform_2, window_bounds = array<i64: 1, 4, 128>}]} {
    %c0_i32 = arith.constant 0 : i32
    %0 = arith.cmpi eq, %arg1, %c0_i32 : i32
    %1 = arith.extui %0 : i1 to i32
    %c0_i32_0 = arith.constant 0 : i32
    %2 = arith.cmpi ne, %1, %c0_i32_0 : i32
    scf.if %2 {
      %cst_28 = arith.constant 0.000000e+00 : f32
      %53 = vector.broadcast %cst_28 : f32 to vector<4x128xf32>
      %c0_29 = arith.constant 0 : index
      %c0_30 = arith.constant 0 : index
      %c0_31 = arith.constant 0 : index
      %54 = vector.load %arg4[%c0_29, %c0_30, %c0_31] : memref<1x4x128xf32, #tpu.memory_space<vmem>>, vector<1x4x128xf32>
      %55 = vector.shape_cast %54 : vector<1x4x128xf32> to vector<4x128xf32>
      %56 = vector.shape_cast %53 : vector<4x128xf32> to vector<1x4x128xf32>
      tpu.vector_store %arg4[%c0_29, %c0_30, %c0_31], %56 {strides = array<i32>} : memref<1x4x128xf32, #tpu.memory_space<vmem>>, vector<1x4x128xf32>,
    } else {
    }
    %c0 = arith.constant 0 : index
    %c0_1 = arith.constant 0 : index
    %3 = vector.load %arg2[%c0, %c0_1] : memref<16x128xf32, #tpu.memory_space<vmem>>, vector<16x128xf32>
    %c0_2 = arith.constant 0 : index
    %c0_3 = arith.constant 0 : index
    %4 = vector.load %arg3[%c0_2, %c0_3] : memref<16x128xf32, #tpu.memory_space<vmem>>, vector<16x128xf32>
    %c1_i32 = arith.constant 1 : i32
    %5 = arith.muli %arg0, %c1_i32 : i32
    %6 = arith.addi %5, %arg1 : i32
    %c16_i32 = arith.constant 16 : i32
    %7 = arith.muli %6, %c16_i32 : i32
    %8 = tpu.iota {dimensions = array<i32: 0>} : vector<16x128xi32>
    %9 = vector.broadcast %7 : i32 to vector<16x128xi32>
    %10 = arith.addi %9, %8 : vector<16x128xi32>
    %c16_i32_4 = arith.constant 16 : i32
    %11 = vector.broadcast %c16_i32_4 : i32 to vector<16x128xi32>
    %12 = arith.cmpi slt, %10, %11 : vector<16x128xi32>
    %cst = arith.constant 0.000000e+00 : f32
    %13 = vector.broadcast %cst : f32 to vector<16x128xf32>
    %14 = arith.select %12, %3, %13 : vector<16x128xi1>, vector<16x128xf32>
    %cst_5 = arith.constant 0.000000e+00 : f32
    %15 = vector.broadcast %cst_5 : f32 to vector<16x128xf32>
    %16 = arith.select %12, %4, %15 : vector<16x128xi1>, vector<16x128xf32>
    %17 = math.log %14 : vector<16x128xf32>
    %cst_6 = arith.constant -1.000000e+02 : f32
    %18 = vector.broadcast %cst_6 : f32 to vector<16x128xf32>
    %19 = arith.maximumf %17, %18 : vector<16x128xf32>
    %cst_7 = arith.constant 0.000000e+00 : f32
    %20 = vector.broadcast %cst_7 : f32 to vector<16x128xf32>
    %21 = arith.subf %20, %14 : vector<16x128xf32>
    %22 = math.log1p %21 : vector<16x128xf32>
    %cst_8 = arith.constant -1.000000e+02 : f32
    %23 = vector.broadcast %cst_8 : f32 to vector<16x128xf32>
    %24 = arith.maximumf %22, %23 : vector<16x128xf32>
    %25 = arith.subf %19, %24 : vector<16x128xf32>
    %26 = arith.mulf %16, %25 : vector<16x128xf32>
    %27 = arith.addf %24, %26 : vector<16x128xf32>
    %c0_9 = arith.constant 0 : index
    %c0_10 = arith.constant 0 : index
    %c0_11 = arith.constant 0 : index
    %28 = vector.load %arg4[%c0_9, %c0_10, %c0_11] : memref<1x4x128xf32, #tpu.memory_space<vmem>>, vector<1x1x128xf32>
    %29 = vector.shape_cast %28 : vector<1x1x128xf32> to vector<128xf32>
    %cst_12 = arith.constant dense<0.000000e+00> : vector<128xf32>
    %30 = vector.multi_reduction <add>, %27, %cst_12 [0] : vector<16x128xf32> to vector<128xf32>
    %31 = arith.addf %29, %30 : vector<128xf32>
    %c0_13 = arith.constant 0 : index
    %c0_14 = arith.constant 0 : index
    %c0_15 = arith.constant 0 : index
    %32 = vector.load %arg4[%c0_13, %c0_14, %c0_15] : memref<1x4x128xf32, #tpu.memory_space<vmem>>, vector<1x1x128xf32>
    %33 = vector.shape_cast %32 : vector<1x1x128xf32> to vector<128xf32>
    %34 = vector.shape_cast %31 : vector<128xf32> to vector<1x1x128xf32>
    tpu.vector_store %arg4[%c0_13, %c0_14, %c0_15], %34 {strides = array<i32>} : memref<1x4x128xf32, #tpu.memory_space<vmem>>, vector<1x1x128xf32>,
    %c0_16 = arith.constant 0 : index
    %c1 = arith.constant 1 : index
    %c0_17 = arith.constant 0 : index
    %35 = vector.load %arg4[%c0_16, %c1, %c0_17] : memref<1x4x128xf32, #tpu.memory_space<vmem>>, vector<1x1x128xf32>
    %36 = vector.shape_cast %35 : vector<1x1x128xf32> to vector<128xf32>
    %37 = arith.mulf %14, %16 : vector<16x128xf32>
    %cst_18 = arith.constant dense<0.000000e+00> : vector<128xf32>
    %38 = vector.multi_reduction <add>, %37, %cst_18 [0] : vector<16x128xf32> to vector<128xf32>
    %39 = arith.addf %36, %38 : vector<128xf32>
    %c0_19 = arith.constant 0 : index
    %c1_20 = arith.constant 1 : index
    %c0_21 = arith.constant 0 : index
    %40 = vector.load %arg4[%c0_19, %c1_20, %c0_21] : memref<1x4x128xf32, #tpu.memory_space<vmem>>, vector<1x1x128xf32>
    %41 = vector.shape_cast %40 : vector<1x1x128xf32> to vector<128xf32>
    %42 = vector.shape_cast %39 : vector<128xf32> to vector<1x1x128xf32>
    tpu.vector_store %arg4[%c0_19, %c1_20, %c0_21], %42 {strides = array<i32>} : memref<1x4x128xf32, #tpu.memory_space<vmem>>, vector<1x1x128xf32>,
    %c0_22 = arith.constant 0 : index
    %c2 = arith.constant 2 : index
    %c0_23 = arith.constant 0 : index
    %43 = vector.load %arg4[%c0_22, %c2, %c0_23] : memref<1x4x128xf32, #tpu.memory_space<vmem>>, vector<1x1x128xf32>
    %44 = vector.shape_cast %43 : vector<1x1x128xf32> to vector<128xf32>
    %45 = arith.mulf %14, %14 : vector<16x128xf32>
    %46 = arith.mulf %16, %16 : vector<16x128xf32>
    %47 = arith.addf %45, %46 : vector<16x128xf32>
    %cst_24 = arith.constant dense<0.000000e+00> : vector<128xf32>
    %48 = vector.multi_reduction <add>, %47, %cst_24 [0] : vector<16x128xf32> to vector<128xf32>
    %49 = arith.addf %44, %48 : vector<128xf32>
    %c0_25 = arith.constant 0 : index
    %c2_26 = arith.constant 2 : index
    %c0_27 = arith.constant 0 : index
    %50 = vector.load %arg4[%c0_25, %c2_26, %c0_27] : memref<1x4x128xf32, #tpu.memory_space<vmem>>, vector<1x1x128xf32>
    %51 = vector.shape_cast %50 : vector<1x1x128xf32> to vector<128xf32>
    %52 = vector.shape_cast %49 : vector<128xf32> to vector<1x1x128xf32>
    tpu.vector_store %arg4[%c0_25, %c2_26, %c0_27], %52 {strides = array<i32>} : memref<1x4x128xf32, #tpu.memory_space<vmem>>, vector<1x1x128xf32>,
    return
  }
  func.func @transform_0(%arg0: i32, %arg1: i32) -> (i32, i32) {
    %c1_i32 = arith.constant 1 : i32
    %0 = arith.muli %arg0, %c1_i32 : i32
    %1 = arith.addi %0, %arg1 : i32
    %c0_i32 = arith.constant 0 : i32
    %2 = arith.minsi %1, %c0_i32 : i32
    %c0_i32_0 = arith.constant 0 : i32
    %c0_i32_1 = arith.constant 0 : i32
    return %2, %c0_i32_0 : i32, i32
  }
  func.func @transform_1(%arg0: i32, %arg1: i32) -> (i32, i32) {
    %c1_i32 = arith.constant 1 : i32
    %0 = arith.muli %arg0, %c1_i32 : i32
    %1 = arith.addi %0, %arg1 : i32
    %c0_i32 = arith.constant 0 : i32
    %2 = arith.minsi %1, %c0_i32 : i32
    %c0_i32_0 = arith.constant 0 : i32
    %c0_i32_1 = arith.constant 0 : i32
    return %2, %c0_i32_0 : i32, i32
  }
  func.func @transform_2(%arg0: i32, %arg1: i32) -> (i32, i32, i32) {
    %c0_i32 = arith.constant 0 : i32
    %c0_i32_0 = arith.constant 0 : i32
    %c0_i32_1 = arith.constant 0 : i32
    return %arg0, %c0_i32, %c0_i32_0 : i32, i32, i32
  }
}

</mosaic_0001>

<bundles_post_ra>
// kernel: tpu_custom_call.1
= control target key start
LH: loop header
LB: loop body
LE: loop exit
PB: predicated region body
PF: predicated region fallthrough
CT: control target
= control target key end

     0   :  { %7 = vsyncpa [#allocation3], 0  ;;  %s981_s0 = inlined_call_operand.hbm [shape: f32[16,128], index: 0, kind: input, shape index: {}]   ;;  %s982_s1 = inlined_call_operand.hbm [shape: f32[16,128], index: 1, kind: input, shape index: {}]   ;;  %s983_s2 = inlined_call_operand.hbm [shape: f32[2,4,128], index: 2, kind: output, shape index: {}]  }
   0x1   :  { %9 = vsyncpa [#allocation3 + $0x1], 0 }
   0x2   :  { %10 = vsyncpa [#allocation6], 0 }
   0x3   :  { %12 = vsyncpa [#allocation6 + $0x1], 0 }
   0x4   :  { %13 = vsyncpa [#allocation4], 0 }
   0x5   :  { %15 = vsyncpa [#allocation4 + $0x1], 0  ;;  %s763_s9 = smov 0   ;;  %s765_s10 = smov 0  }
   0x6   :  { %s767_s11 = smov 0   ;;  %s769_s12 = smov 0  }
   0x7   :  { %s771_s13 = smov 0   ;;  %s773_s14 = smov 0  }
   0x8   :  { %s775_s15 = smov 0   ;;  %s777_s16 = smov 0  }
   0x9 LB: > { %s450_s17 = sadd.s32 4294967295, %s740_s16   ;;  %s451_s18 = sadd.s32 4294967294, %s740_s16   ;;  %s740_s16 = sphi %s777_s16, %s21_s16   ;;  %s736_s15 = sphi %s775_s15, %s1002_s15   ;;  %s732_s14 = sphi %s773_s14, %s1001_s14   ;;  %s728_s13 = sphi %s771_s13, %s971_s13   ;;  %s724_s12 = sphi %s769_s12, %s1000_s12   ;;  %s720_s11 = sphi %s767_s11, %s999_s11   ;;  %s716_s10 = sphi %s765_s10, %s998_s10   ;;  %s712_s9 = sphi %s763_s9, %s997_s9  }
   0xa   : > { %s33_s19 = sadd.s32 1, %s736_s15  ;;  %p709_p1 = scmp.ne.s32.totalorder %s728_s13, 0 }
   0xb   : > { %p35_p0 = scmp.ge.s32.totalorder %s33_s19, 2  ;;  %p54_p2 = scmp.eq.s32.totalorder %s740_s16, 0 }
   0xc   : > { %p59_p3 = scmp.ne.s32.totalorder %s728_s13, %s724_s12  ;;  %p60_p5 = scmp.eq.s32.totalorder %s450_s17, 0 }
   0xd   : > { %s1004_s19 = smov (%p35_p0, %s33_s19), 0  ;;  %p809_p4 = por %p709_p1, %p54_p2 }
   0xe   : > { %p813_p6 = por %p60_p5, %p59_p3  ;;  %s101_s22 = ssub.s32 %s736_s15, %s1004_s19 }
   0xf   : > { %p102_p7 = scmp.eq.s32.totalorder %s101_s22, 0  ;;  %s104_s23 = sadd.s32 1, %s720_s11 }
  0x10   : > { %s987_s21 = scalar_select %p813_p6, 1, 0 }
  0x11   : > { %s821_s24 = scalar_select %p102_p7, %s720_s11, %s104_s23  }
  0x12   : > { %p114_p8 = scmp.ne.s32.totalorder %s720_s11, %s716_s10  ;;  %p115_p9 = scmp.eq.s32.totalorder %s450_s17, 1 }
  0x13   : > { %p120_p10 = scmp.ne.s32.totalorder %s716_s10, %s712_s9  ;;  %p121_p11 = scmp.eq.s32.totalorder %s451_s18, 1 }
  0x14   : > { %p827_p12 = por %p115_p9, %p114_p8  ;;  %p488_p1 = scmp.lt.s32.totalorder %s740_s16, 2 }
  0x15   : > { %p832_p0 = por %p121_p11, %p120_p10  ;;  %s742_s27 = smov [#allocation2]  }
  0x16   : > { %s988_s25 = scalar_select %p827_p12, 1, 0 }
  0x17   : > { %s989_s26 = scalar_select %p832_p0, 1, 0 }
  0x18   : > { %s155_s28 = sshll.u32 %s742_s27, 4  ;;  %p839_p2 = pnand %p488_p1, %p809_p4  ;;  %s156_s28 = int_to_ptr.vmem [resolvable:$true] %s155_s28 }
  0x19   : > { %s573_s4 = scalar_lea.hbm %s981_s0, 256 }
  0x1a   : > { %p574_p3 = scmp.ne.s32.totalorder %s981_s0, %s573_s4  ;;  %p575_p5 = pneg %p839_p2 }
  0x1b   : > { %p580_p8 = scmp.lt.u32.totalorder %s573_s4, %s573_s4  ;;  %p582_p9 = scmp.lt.u32.totalorder %s573_s4, %s981_s0 }
  0x1c   : > { %p576_p7 = pnand %p575_p5, %p574_p3 }
  0x1d   : > { %p583_p10 = por %p582_p9, %p580_p8 }
  0x1e   : > { %p577_p4 = pneg %p576_p7 }
  0x20   : > { %p584_p11 = pnand %p583_p10, %p577_p4 }
  0x22   : > { %587 = shalt.err (!%p584_p11)
}
  0x23   : > { %s588_s12 = scalar_lea.vmem %s156_s28, 256  ;;  %s595_s17 = scalar_lea.vmem %s156_s28, 512 }
  0x24   : > { %p589_p1 = scmp.ne.s32.totalorder %s156_s28, %s588_s12  ;;  %p596_p12 = scmp.lt.s32.totalorder %s156_s28, %s156_s28 }
  0x25   : > { %p597_p6 = scmp.lt.s32.totalorder %s595_s17, %s588_s12 }
  0x26   : > { %p591_p13 = pnand %p589_p1, %p575_p5 }
  0x27   : > { %p598_p3 = por %p597_p6, %p596_p12 }
  0x28   : > { %p592_p0 = pneg %p591_p13 }
  0x2a   : > { %p599_p7 = pnand %p598_p3, %p592_p0 }
  0x2c   : > { %602 = shalt.err (!%p599_p7)
}
  0x2d   : > { %s743_s18 = smov 128   ;;  %s744_s20 = smov 8  }
  0x2e   : > { %480 = dma.hbm_to_vmem [thread:$0]  (!%p839_p2), %s981_s0, 256, %s156_s28, [#allocation3], %s743_s18, %s743_s18, %s744_s20  }
  0x2f   : > { %p460_p13 = scmp.ge.s32.totalorder %s740_s16, 1  ;;  %p187_p4 = scmp.lt.s32.totalorder %s740_s16, 3 }
  0x30   : > { %s745_s30 = smov [#allocation5]   ;;  %s603_s6 = scalar_lea.hbm %s982_s1, 256 }
  0x31   : > { %p870_p8 = pnand %p460_p13, %p187_p4  ;;  %s179_s3 = sshll.u32 %s745_s30, 4  ;;  %s180_s3 = int_to_ptr.vmem [resolvable:$true] %s179_s3 }
  0x32   : > { %p604_p6 = scmp.ne.s32.totalorder %s982_s1, %s603_s6  ;;  %p610_p9 = scmp.lt.u32.totalorder %s603_s6, %s603_s6 }
  0x33   : > { %s991_s27 = scalar_select %p870_p8, 1, 0 }
  0x34   : > { %p606_p12 = pnand %p604_p6, %p575_p5  ;;  %p612_p10 = scmp.lt.u32.totalorder %s603_s6, %s982_s1 }
  0x36   : > { %p607_p0 = pneg %p606_p12  ;;  %p613_p11 = por %p612_p10, %p610_p9 }
  0x38   : > { %p614_p1 = pnand %p613_p11, %p607_p0 }
  0x3a   : > { %617 = shalt.err (!%p614_p1)
}
  0x3b   : > { %s618_s17 = scalar_lea.vmem %s180_s3, 256  ;;  %s625_s22 = scalar_lea.vmem %s180_s3, 512 }
  0x3c   : > { %p619_p3 = scmp.ne.s32.totalorder %s180_s3, %s618_s17  ;;  %p626_p4 = scmp.lt.s32.totalorder %s180_s3, %s180_s3 }
  0x3d   : > { %p627_p8 = scmp.lt.s32.totalorder %s625_s22, %s618_s17 }
  0x3e   : > { %p621_p7 = pnand %p619_p3, %p575_p5 }
  0x3f   : > { %p628_p6 = por %p627_p8, %p626_p4 }
  0x40   : > { %p622_p13 = pneg %p621_p7 }
  0x42   : > { %p629_p12 = pnand %p628_p6, %p622_p13 }
  0x44   : > { %632 = shalt.err (!%p629_p12)
}
  0x45   : > { %483 = dma.hbm_to_vmem [thread:$0]  (!%p839_p2), %s982_s1, 256, %s180_s3, [#allocation6], %s743_s18, %s743_s18, %s744_s20  }
  0x46   : > { %p992_p0 = scmp.ne.s32.totalorder %s991_s27, 0 }
  0x47   : > { %s193_s4 = sand.u32 (!%p992_p0), 1, %s728_s13   ;;  %p993_p5 = scmp.ne.s32.totalorder (!%p992_p0), %s987_s21, 0 }
  0x48   : > { %191 = sbr.rel (%p992_p0) target bundleno = 148 (0x94), region = 28  ;;  %s461_s5 = sshll.u32 (!%p992_p0), %s193_s4, 4 }
  0x49   : > { %s194_s6 = scalar_lea.sflag (!%p992_p0), [#allocation3], %s193_s4  ;;  %s197_s7 = scalar_lea.vmem (!%p992_p0), [#allocation2], %s461_s5 }
  0x4f   : > { %698 = dma.done.wait (%p993_p5), %s194_s6, 256  }
  0x50   : > { %700 = vsyncadd (%p993_p5), %s194_s6, 4294967040  ;;  %s203_s29 = scalar_lea.sflag [#allocation6], %s193_s4  ;;  %s206_s8 = scalar_lea.vmem [#allocation5], %s461_s5 }
  0x51   : > { %702 = dma.done.wait (%p993_p5), %s203_s29, 256  }
  0x52   : > { %704 = vsyncadd (%p993_p5), %s203_s29, 4294967040  ;;  %s229_s18 = sand.u32 1, %s716_s10   ;;  %s464_s20 = sshll.u32 %s732_s14, 4  ;;  %v251_v0 = vlaneseq  ;;  %v746_v3 = vmov 0.0   ;;  %v245_v7 = vld [vmem:[%s197_s7] sm:$0xff]  ;;  %v246_v8 = vld [vmem:[%s197_s7 + $0x8] sm:$0xff] }
  0x53   : > { %s463_s27 = sshll.u32 %s229_s18, 2  ;;  %v254_v1 = vstv %s464_s20  ;;  %v247_v9 = vld [vmem:[%s206_s8] sm:$0xff]  ;;  %v248_v10 = vld [vmem:[%s206_s8 + $0x8] sm:$0xff]  ;;  %s466_s21 = sshll.u32 %s732_s14, 6 }
  0x54   : > { %v252_v2 = vshrl.u32 %v251_v0, 7  ;;  %s912_s3 = scalar_lea.vmem [#allocation7], %s463_s27  ;;  %s925_s22 = scalar_lea.hbm %s983_s2, %s466_s21 }
  0x55   : > { %244 = vst [vmem:[%s912_s3] sm:$0xf] %v746_v3  ;;  %s349_s28 = sshll.u32 %s912_s3, 4  ;;  %s336_s23 = scalar_lea.sflag [#allocation4], %s229_s18  ;;  %s927_s28 = int_to_ptr.vmem [resolvable:$true] %s349_s28 }
  0x56   : > { %v253_v4 = vadd.s32 8, %v252_v2  ;;  %v255_v5 = vadd.s32 %v254_v1, %v252_v2  ;;  %s633_s30 = scalar_lea.vmem %s927_s28, 64  ;;  %p994_p8 = scmp.ne.s32.totalorder %s988_s25, 0 }
  0x57   : > { %p634_p2 = scmp.ne.s32.totalorder %s927_s28, %s633_s30  ;;  %s747_s14 = smov [#allocation7]  }
  0x58   : > { %v256_v6 = vadd.s32 %v254_v1, %v253_v4  ;;  %vm257_vm0 = vcmp.lt.s32.totalorder %v255_v5, 16  ;;  %s637_s4 = sshll.u32 %s747_s14, 4  ;;  %s638_s4 = int_to_ptr.vmem [resolvable:$false] %s637_s4 }
  0x59   : > { %v259_v11 = vsel %vm257_vm0, %v245_v7, 0.0  ;;  %v261_v12 = vsel %vm257_vm0, %v247_v9, 0.0  ;;  %p635_p9 = pnand %p634_p2, %p994_p8  ;;  %s639_s5 = scalar_lea.vmem %s638_s4, 128 }
  0x5a   : > { %vm258_vm1 = vcmp.lt.s32.totalorder %v256_v6, 16  ;;  %565 = vlog2.f32 %v259_v11  ;;  %v269_v15 = vsub.f32 0.0, %v259_v11  ;;  %v308_v17 = vmul.f32 %v261_v12, %v259_v11  ;;  %p640_p11 = scmp.lt.s32.totalorder %s927_s28, %s638_s4  ;;  %p641_p1 = scmp.lt.s32.totalorder %s639_s5, %s633_s30 }
  0x5b   : > { %v260_v13 = vsel %vm258_vm1, %v246_v8, 0.0  ;;  %v262_v14 = vsel %vm258_vm1, %v248_v10, 0.0  ;;  %v320_v22 = vmul.f32 %v259_v11, %v259_v11  ;;  %v322_v27 = vmul.f32 %v261_v12, %v261_v12  ;;  %p636_p10 = pneg %p635_p9 }
  0x5c   : > { %567 = vlog2.f32 %v260_v13  ;;  %v270_v16 = vsub.f32 0.0, %v260_v13  ;;  %v309_v18 = vmul.f32 %v262_v14, %v260_v13  ;;  %v271_v19 = vadd.f32 1.0, %v269_v15  ;;  %v307_v48 = vld [vmem:[%s912_s3 + $0x1] sm:$0x1]  ;;  %v319_v2 = vld [vmem:[%s912_s3 + $0x2] sm:$0x1]  ;;  %p642_p3 = por %p641_p1, %p640_p11 }
  0x5d   : > { %v321_v23 = vmul.f32 %v260_v13, %v260_v13  ;;  %v274_v24 = vmul.f32 -0.5, %v269_v15  ;;  %v323_v28 = vmul.f32 %v262_v14, %v262_v14  ;;  %v324_v30 = vadd.f32 %v322_v27, %v320_v22 }
  0x5e   : > { %v280_v20 = vadd.f32 1.0, %v270_v16  ;;  %v310_v21 = vadd.f32 %v309_v18, %v308_v17  ;;  %569 = vlog2.f32 %v271_v19  ;;  %v283_v26 = vmul.f32 -0.5, %v270_v16  ;;  %v297_v17 = vld [vmem:[%s912_s3] sm:$0x1]  ;;  %p643_p7 = pnand %p642_p3, %p636_p10 }
  0x5f   : > { %v325_v31 = vadd.f32 %v323_v28, %v321_v23  ;;  %v275_v32 = vadd.f32 1.0, %v274_v24  ;;  %v277_v35 = vand.u32 2147483647, %v269_v15  ;;  %v286_v39 = vand.u32 2147483647, %v270_v16 }
  0x60   : > { %571 = vlog2.f32 %v280_v20  ;;  %v311_v25 = vrot.slane %v310_v21, 4  ;;  %v284_v36 = vadd.f32 1.0, %v283_v26 }
  0x61   : > { %v326_v37 = vadd.f32 %v325_v31, %v324_v30  ;;  %v276_v44 = vmul.f32 %v275_v32, %v269_v15  ;;  %vm278_vm2 = vcmp.lt.f32.partialorder %v277_v35, 0.0004427343  ;;  %vm287_vm3 = vcmp.lt.f32.partialorder %v286_v39, 0.0004427343 }
  0x62   : > { %v312_v29 = vadd.f32 %v311_v25, %v310_v21  ;;  %v285_v47 = vmul.f32 %v284_v36, %v270_v16 }
  0x63   : > { %v327_v42 = vrot.slane %v326_v37, 4 }
  0x64   : > { %v313_v33 = vrot.slane %v312_v29, 2  ;;  %v566_v34 = vpop.eup %565 }
  0x65   : > { %v264_v41 = vmul.f32 0.6931472, %v566_v34  ;;  %v328_v49 = vadd.f32 %v327_v42, %v326_v37 }
  0x66   : > { %v568_v38 = vpop.eup %567  ;;  %v314_v40 = vadd.f32 %v313_v33, %v312_v29 }
  0x67   : > { %v266_v43 = vmul.f32 0.6931472, %v568_v38  ;;  %v267_v53 = vmax.f32 %v264_v41, -100.0  ;;  %v329_v55 = vrot.slane %v328_v49, 2 }
  0x68   : > { %v315_v45 = vrot.slane %v314_v40, 1  ;;  %v570_v46 = vpop.eup %569 }
  0x69   : > { %v273_v51 = vmul.f32 0.6931472, %v570_v46  ;;  %v268_v56 = vmax.f32 %v266_v43, -100.0  ;;  %v330_v61 = vadd.f32 %v329_v55, %v328_v49 }
  0x6a   : > { %v572_v50 = vpop.eup %571  ;;  %v316_v52 = vadd.f32 %v315_v45, %v314_v40 }
  0x6b   : > { %v282_v54 = vmul.f32 0.6931472, %v572_v50  ;;  %v279_v57 = vsel %vm278_vm2, %v276_v44, %v273_v51  ;;  %v331_v0 = vrot.slane %v330_v61, 1 }
  0x6c   : > { %v317_v58 = vadd.f32 %v316_v52, %v307_v48  ;;  %v289_v60 = vmax.f32 %v279_v57, -100.0 }
  0x6d   : > { %v288_v59 = vsel %vm287_vm3, %v285_v47, %v282_v54  ;;  %v332_v4 = vadd.f32 %v331_v0, %v330_v61 }
  0x6e   : > { %v290_v62 = vmax.f32 %v288_v59, -100.0  ;;  %318 = vst [vmem:[%s912_s3 + $0x1] sm:$0x1] %v317_v58  ;;  %v291_v63 = vsub.f32 %v267_v53, %v289_v60 }
  0x6f   : > { %v333_v7 = vadd.f32 %v332_v4, %v319_v2 }
  0x70   : > { %v292_v1 = vsub.f32 %v268_v56, %v290_v62  ;;  %v293_v3 = vmul.f32 %v291_v63, %v261_v12 }
  0x71   : > { %334 = vst [vmem:[%s912_s3 + $0x2] sm:$0x1] %v333_v7 }
  0x72   : > { %v294_v5 = vmul.f32 %v292_v1, %v262_v14  ;;  %v295_v6 = vadd.f32 %v293_v3, %v289_v60 }
  0x74   : > { %v296_v8 = vadd.f32 %v294_v5, %v290_v62 }
  0x76   : > { %v298_v9 = vadd.f32 %v296_v8, %v295_v6 }
  0x78   : > { %v299_v10 = vrot.slane %v298_v9, 4 }
  0x7a   : > { %v300_v11 = vadd.f32 %v299_v10, %v298_v9 }
  0x7c   : > { %v301_v13 = vrot.slane %v300_v11, 2 }
  0x7e   : > { %v302_v15 = vadd.f32 %v301_v13, %v300_v11 }
  0x80   : > { %v303_v16 = vrot.slane %v302_v15, 1 }
  0x82   : > { %v304_v18 = vadd.f32 %v303_v16, %v302_v15 }
  0x84   : > { %v305_v12 = vadd.f32 %v304_v18, %v297_v17 }
  0x86   : > { %306 = vst [vmem:[%s912_s3] sm:$0x1] %v305_v12 }
  0x87   : > { %646 = shalt.err (!%p643_p7)
}
  0x88   : > { %s647_s6 = scalar_lea.hbm %s925_s22, 64  ;;  %s651_s8 = scalar_lea.hbm %s983_s2, 128 }
  0x89   : > { %p648_p13 = scmp.ne.s32.totalorder %s925_s22, %s647_s6  ;;  %p652_p12 = scmp.lt.u32.totalorder %s925_s22, %s983_s2 }
  0x8a   : > { %p653_p0 = scmp.lt.u32.totalorder %s651_s8, %s647_s6  ;;  %p655_p2 = scmp.lt.u32.totalorder %s647_s6, %s925_s22 }
  0x8b   : > { %p649_p4 = pnand %p648_p13, %p994_p8 }
  0x8c   : > { %p654_p5 = por %p653_p0, %p652_p12 }
  0x8d   : > { %p650_p6 = pneg %p649_p4 }
  0x8e   : > { %p656_p9 = por %p655_p2, %p654_p5 }
  0x90   : > { %p657_p10 = pnand %p656_p9, %p650_p6 }
  0x92   : > { %660 = shalt.err (!%p657_p10)
}
  0x93   : > { %475 = dma.vmem_to_hbm [thread:$0]  (%p994_p8), %s927_s28, 64, %s925_s22, %s336_s23  }
  0x94 PF: > { %s361_s27 = sand.u32 1, %s712_s9   ;;  %p995_p11 = scmp.ne.s32.totalorder %s989_s26, 0 }
  0x95   : > { %p996_p1 = scmp.ge.s32.totalorder %s740_s16, 2  ;;  %s362_s3 = scalar_lea.sflag [#allocation4], %s361_s27 }
  0x97   : > { %p485_p3 = pnand %p996_p1, %p995_p11 }
  0x99   : > { %706 = dma.done.wait (!%p485_p3), %s362_s3, 64  }
  0x9a   : > { %708 = vsyncadd (!%p485_p3), %s362_s3, 4294967232  ;;  %s21_s16 = sadd.s32 1, %s740_s16   ;;  %s997_s9 = smov %s716_s10 }
  0x9b   : > { %p18_p7 = scmp.ge.s32.totalorder %s21_s16, 4   ;;  %s998_s10 = smov %s720_s11 }
  0x9c   : > { %s999_s11 = smov %s821_s24  ;;  %s1000_s12 = smov %s728_s13 }
  0x9d   : > { %s971_s13 = smov 0   ;;  %s1001_s14 = smov %s736_s15 }
  0x9e   : > { %s1002_s15 = smov %s1004_s19  ;;  %20 = sbr.rel (!%p18_p7) target bundleno = 9 (0x9), region = 90 }
  0xa5   :  { %367 = vsyncpa [#allocation3], 1 }
  0xa6   :  { %369 = vsyncpa [#allocation3 + $0x1], 1 }
  0xa7   :  { %370 = vsyncpa [#allocation6], 1 }
  0xa8   :  { %372 = vsyncpa [#allocation6 + $0x1], 1 }
  0xa9   :  { %373 = vsyncpa [#allocation4], 1 }
  0xaa   :  { %375 = vsyncpa [#allocation4 + $0x1], 1 }

</bundles_post_ra>
